<compile_context>
chip_gen: v6e
topology: v6e:2x2x1
jax: 0.10.0
libtpu: 0.0.40
codegen_flags: <defaults>
</compile_context>

<pallas_src>
import functools
import math

import jax
import jax.numpy as jnp
from jax import lax
from jax.experimental import pallas as pl
from jax.experimental.pallas import tpu as pltpu

_LANES = 1024       # lane-dense last dim (multiple of 128)
_ROW_TILE = 256     # rows per grid step: (256, 1024) f32 = 1 MiB per buffer
_N_UNIFORM = 4      # uniforms summed per normal sample (CLT approximation)


def _hash_u32(v):
    """lowbias32-style integer mixer (uint32 -> uint32), VPU-only ops."""
    v = v ^ (v >> jnp.uint32(16))
    v = v * jnp.uint32(0x7FEB352D)
    v = v ^ (v >> jnp.uint32(15))
    v = v * jnp.uint32(0x846CA68B)
    v = v ^ (v >> jnp.uint32(16))
    return v


def _gaussian_dropout_kernel(seed_ref, x_ref, o_ref, *, p, lanes):
    tm, tl = x_ref.shape

    # Global element index: unique per element, independent of tile size/grid.
    row_off = (pl.program_id(0) * tm).astype(jnp.uint32)
    rows = lax.broadcasted_iota(jnp.int32, (tm, tl), 0).astype(jnp.uint32)
    cols = lax.broadcasted_iota(jnp.int32, (tm, tl), 1).astype(jnp.uint32)
    idx = (rows + row_off) * jnp.uint32(lanes) + cols

    key = seed_ref[0].astype(jnp.uint32) * jnp.uint32(0x9E3779B9)

    # Sum _N_UNIFORM uniform draws (23-bit mantissas accumulated as uint32).
    mant_sum = None
    for k in range(_N_UNIFORM):
        round_key = key + jnp.uint32(((k + 1) * 0x9E3779B9) & 0xFFFFFFFF)
        bits = _hash_u32(idx ^ round_key)
        mant = bits >> jnp.uint32(9)               # 23 random bits
        mant_sum = mant if mant_sum is None else mant_sum + mant

    # Affine map folding p:  p * sqrt(12/N) * (sum(u) - N/2)
    #   with u_k = mant_k / 2^23, so noise = mant_sum * c1 + c0.
    scale = math.sqrt(12.0 / _N_UNIFORM)
    c1 = jnp.float32(p * scale / float(1 << 23))
    c0 = jnp.float32(-p * scale * _N_UNIFORM / 2.0)
    noise = mant_sum.astype(jnp.int32).astype(jnp.float32) * c1 + c0

    xv = x_ref[...]
    if xv.dtype != jnp.float32:
        xv = xv.astype(jnp.float32)
    o_ref[...] = (xv + noise).astype(o_ref.dtype)


def gaussian_dropout(x, p=0.1, training=True, seed=0):
    """Pallas implementation of GaussianDropout.forward (any input shape)."""
    if not training:
        # eval mode is the identity, exactly as in the PyTorch module
        return x

    orig_shape = x.shape
    orig_dtype = x.dtype
    total = 1
    for d in orig_shape:
        total *= int(d)

    lanes = _LANES
    n_rows = pl.cdiv(total, lanes)
    row_tile = min(_ROW_TILE, n_rows)
    n_rows_padded = pl.cdiv(n_rows, row_tile) * row_tile
    padded_total = n_rows_padded * lanes

    x_flat = x.reshape(-1)
    if padded_total != total:
        x_flat = jnp.pad(x_flat, (0, padded_total - total))
    x2 = x_flat.reshape(n_rows_padded, lanes)

    seed_arr = jnp.asarray([seed], dtype=jnp.int32)
    grid = (n_rows_padded // row_tile,)

    out2 = pl.pallas_call(
        functools.partial(_gaussian_dropout_kernel, p=float(p), lanes=lanes),
        out_shape=jax.ShapeDtypeStruct(x2.shape, orig_dtype),
        grid_spec=pltpu.PrefetchScalarGridSpec(
            num_scalar_prefetch=1,          # seed lands in SMEM
            grid=grid,
            in_specs=[pl.BlockSpec((row_tile, lanes), lambda i, seed: (i, 0))],
            out_specs=pl.BlockSpec((row_tile, lanes), lambda i, seed: (i, 0)),
        ),
        compiler_params=pltpu.CompilerParams(
            dimension_semantics=("parallel",),   # shard across TCs on v7x
        ),
    )(seed_arr, x2)

    out_flat = out2.reshape(-1)
    if padded_total != total:
        out_flat = out_flat[:total]
    return out_flat.reshape(orig_shape)


if __name__ == "__main__":
    key = jax.random.PRNGKey(0)
    # Small NCHW input consistent with how the module is used.
    x = jax.random.normal(key, (2, 4, 16, 16), dtype=jnp.float32)

    p = 0.1
    y_train = gaussian_dropout(x, p=p, training=True, seed=0)
    y_eval = gaussian_dropout(x, p=p, training=False)

    y_train = jax.block_until_ready(y_train)
    y_eval = jax.block_until_ready(y_eval)

    # Sanity checks on semantics:
    assert y_train.shape == x.shape and y_train.dtype == x.dtype
    # eval mode is the identity
    assert bool(jnp.all(y_eval == x))
    # training mode adds approx. zero-mean noise with std ~ p
    resid = y_train - x
    assert float(jnp.max(jnp.abs(resid))) > 0.0
    assert abs(float(jnp.mean(resid))) < 5.0 * p
    assert 0.2 * p < float(jnp.std(resid)) < 5.0 * p

    print("KERNEL_OK")
</pallas_src>

<mosaic_0001>
module attributes {stable_mosaic.version = 11 : i64} {
  func.func @_gaussian_dropout_kernel(%arg0: i32, %arg1: memref<1xi32, #tpu.memory_space<smem>>, %arg2: memref<2x1024xf32, #tpu.memory_space<vmem>>, %arg3: memref<2x1024xf32, #tpu.memory_space<vmem>>) attributes {dimension_semantics = [#tpu.dimension_semantics<parallel>], iteration_bounds = array<i64: 1>, scalar_prefetch = 1 : i64, scratch_operands = 0 : i64, tpu.core_type = #tpu.core_type<tc>, window_params = [{transform_indices = @transform_0, window_bounds = array<i64: 2, 1024>}, {transform_indices = @transform_1, window_bounds = array<i64: 2, 1024>}]} {
    %c2_i32 = arith.constant 2 : i32
    %0 = arith.muli %arg0, %c2_i32 : i32
    %1 = tpu.iota {dimensions = array<i32: 0>} : vector<2x1024xi32>
    %2 = tpu.iota {dimensions = array<i32: 1>} : vector<2x1024xi32>
    %3 = vector.broadcast %0 : i32 to vector<2x1024xi32>
    %4 = arith.addi %1, %3 : vector<2x1024xi32>
    %c1024_i32 = arith.constant 1024 : i32
    %5 = vector.broadcast %c1024_i32 : i32 to vector<2x1024xi32>
    %6 = arith.muli %4, %5 : vector<2x1024xi32>
    %7 = arith.addi %6, %2 : vector<2x1024xi32>
    %c0 = arith.constant 0 : index
    %8 = memref.load %arg1[%c0] : memref<1xi32, #tpu.memory_space<smem>>
    %c-1640531527_i32 = arith.constant -1640531527 : i32
    %9 = arith.muli %8, %c-1640531527_i32 : i32
    %c-1640531527_i32_0 = arith.constant -1640531527 : i32
    %10 = arith.addi %9, %c-1640531527_i32_0 : i32
    %11 = vector.broadcast %10 : i32 to vector<2x1024xi32>
    %12 = arith.xori %7, %11 : vector<2x1024xi32>
    %c16_i32 = arith.constant 16 : i32
    %13 = vector.broadcast %c16_i32 : i32 to vector<2x1024xi32>
    %14 = arith.shrui %12, %13 : vector<2x1024xi32>
    %15 = arith.xori %12, %14 : vector<2x1024xi32>
    %c2146121005_i32 = arith.constant 2146121005 : i32
    %16 = vector.broadcast %c2146121005_i32 : i32 to vector<2x1024xi32>
    %17 = arith.muli %15, %16 : vector<2x1024xi32>
    %c15_i32 = arith.constant 15 : i32
    %18 = vector.broadcast %c15_i32 : i32 to vector<2x1024xi32>
    %19 = arith.shrui %17, %18 : vector<2x1024xi32>
    %20 = arith.xori %17, %19 : vector<2x1024xi32>
    %c-2073254261_i32 = arith.constant -2073254261 : i32
    %21 = vector.broadcast %c-2073254261_i32 : i32 to vector<2x1024xi32>
    %22 = arith.muli %20, %21 : vector<2x1024xi32>
    %c16_i32_1 = arith.constant 16 : i32
    %23 = vector.broadcast %c16_i32_1 : i32 to vector<2x1024xi32>
    %24 = arith.shrui %22, %23 : vector<2x1024xi32>
    %25 = arith.xori %22, %24 : vector<2x1024xi32>
    %c9_i32 = arith.constant 9 : i32
    %26 = vector.broadcast %c9_i32 : i32 to vector<2x1024xi32>
    %27 = arith.shrui %25, %26 : vector<2x1024xi32>
    %c1013904242_i32 = arith.constant 1013904242 : i32
    %28 = arith.addi %9, %c1013904242_i32 : i32
    %29 = vector.broadcast %28 : i32 to vector<2x1024xi32>
    %30 = arith.xori %7, %29 : vector<2x1024xi32>
    %c16_i32_2 = arith.constant 16 : i32
    %31 = vector.broadcast %c16_i32_2 : i32 to vector<2x1024xi32>
    %32 = arith.shrui %30, %31 : vector<2x1024xi32>
    %33 = arith.xori %30, %32 : vector<2x1024xi32>
    %c2146121005_i32_3 = arith.constant 2146121005 : i32
    %34 = vector.broadcast %c2146121005_i32_3 : i32 to vector<2x1024xi32>
    %35 = arith.muli %33, %34 : vector<2x1024xi32>
    %c15_i32_4 = arith.constant 15 : i32
    %36 = vector.broadcast %c15_i32_4 : i32 to vector<2x1024xi32>
    %37 = arith.shrui %35, %36 : vector<2x1024xi32>
    %38 = arith.xori %35, %37 : vector<2x1024xi32>
    %c-2073254261_i32_5 = arith.constant -2073254261 : i32
    %39 = vector.broadcast %c-2073254261_i32_5 : i32 to vector<2x1024xi32>
    %40 = arith.muli %38, %39 : vector<2x1024xi32>
    %c16_i32_6 = arith.constant 16 : i32
    %41 = vector.broadcast %c16_i32_6 : i32 to vector<2x1024xi32>
    %42 = arith.shrui %40, %41 : vector<2x1024xi32>
    %43 = arith.xori %40, %42 : vector<2x1024xi32>
    %c9_i32_7 = arith.constant 9 : i32
    %44 = vector.broadcast %c9_i32_7 : i32 to vector<2x1024xi32>
    %45 = arith.shrui %43, %44 : vector<2x1024xi32>
    %46 = arith.addi %27, %45 : vector<2x1024xi32>
    %c-626627285_i32 = arith.constant -626627285 : i32
    %47 = arith.addi %9, %c-626627285_i32 : i32
    %48 = vector.broadcast %47 : i32 to vector<2x1024xi32>
    %49 = arith.xori %7, %48 : vector<2x1024xi32>
    %c16_i32_8 = arith.constant 16 : i32
    %50 = vector.broadcast %c16_i32_8 : i32 to vector<2x1024xi32>
    %51 = arith.shrui %49, %50 : vector<2x1024xi32>
    %52 = arith.xori %49, %51 : vector<2x1024xi32>
    %c2146121005_i32_9 = arith.constant 2146121005 : i32
    %53 = vector.broadcast %c2146121005_i32_9 : i32 to vector<2x1024xi32>
    %54 = arith.muli %52, %53 : vector<2x1024xi32>
    %c15_i32_10 = arith.constant 15 : i32
    %55 = vector.broadcast %c15_i32_10 : i32 to vector<2x1024xi32>
    %56 = arith.shrui %54, %55 : vector<2x1024xi32>
    %57 = arith.xori %54, %56 : vector<2x1024xi32>
    %c-2073254261_i32_11 = arith.constant -2073254261 : i32
    %58 = vector.broadcast %c-2073254261_i32_11 : i32 to vector<2x1024xi32>
    %59 = arith.muli %57, %58 : vector<2x1024xi32>
    %c16_i32_12 = arith.constant 16 : i32
    %60 = vector.broadcast %c16_i32_12 : i32 to vector<2x1024xi32>
    %61 = arith.shrui %59, %60 : vector<2x1024xi32>
    %62 = arith.xori %59, %61 : vector<2x1024xi32>
    %c9_i32_13 = arith.constant 9 : i32
    %63 = vector.broadcast %c9_i32_13 : i32 to vector<2x1024xi32>
    %64 = arith.shrui %62, %63 : vector<2x1024xi32>
    %65 = arith.addi %46, %64 : vector<2x1024xi32>
    %c2027808484_i32 = arith.constant 2027808484 : i32
    %66 = arith.addi %9, %c2027808484_i32 : i32
    %67 = vector.broadcast %66 : i32 to vector<2x1024xi32>
    %68 = arith.xori %7, %67 : vector<2x1024xi32>
    %c16_i32_14 = arith.constant 16 : i32
    %69 = vector.broadcast %c16_i32_14 : i32 to vector<2x1024xi32>
    %70 = arith.shrui %68, %69 : vector<2x1024xi32>
    %71 = arith.xori %68, %70 : vector<2x1024xi32>
    %c2146121005_i32_15 = arith.constant 2146121005 : i32
    %72 = vector.broadcast %c2146121005_i32_15 : i32 to vector<2x1024xi32>
    %73 = arith.muli %71, %72 : vector<2x1024xi32>
    %c15_i32_16 = arith.constant 15 : i32
    %74 = vector.broadcast %c15_i32_16 : i32 to vector<2x1024xi32>
    %75 = arith.shrui %73, %74 : vector<2x1024xi32>
    %76 = arith.xori %73, %75 : vector<2x1024xi32>
    %c-2073254261_i32_17 = arith.constant -2073254261 : i32
    %77 = vector.broadcast %c-2073254261_i32_17 : i32 to vector<2x1024xi32>
    %78 = arith.muli %76, %77 : vector<2x1024xi32>
    %c16_i32_18 = arith.constant 16 : i32
    %79 = vector.broadcast %c16_i32_18 : i32 to vector<2x1024xi32>
    %80 = arith.shrui %78, %79 : vector<2x1024xi32>
    %81 = arith.xori %78, %80 : vector<2x1024xi32>
    %c9_i32_19 = arith.constant 9 : i32
    %82 = vector.broadcast %c9_i32_19 : i32 to vector<2x1024xi32>
    %83 = arith.shrui %81, %82 : vector<2x1024xi32>
    %84 = arith.addi %65, %83 : vector<2x1024xi32>
    %85 = arith.sitofp %84 : vector<2x1024xi32> to vector<2x1024xf32>
    %cst = arith.constant 2.06476543E-8 : f32
    %86 = vector.broadcast %cst : f32 to vector<2x1024xf32>
    %87 = arith.mulf %85, %86 : vector<2x1024xf32>
    %cst_20 = arith.constant -0.346410155 : f32
    %88 = vector.broadcast %cst_20 : f32 to vector<2x1024xf32>
    %89 = arith.addf %87, %88 : vector<2x1024xf32>
    %c0_21 = arith.constant 0 : index
    %c0_22 = arith.constant 0 : index
    %90 = vector.load %arg2[%c0_21, %c0_22] : memref<2x1024xf32, #tpu.memory_space<vmem>>, vector<2x1024xf32>
    %91 = arith.addf %90, %89 : vector<2x1024xf32>
    %c0_23 = arith.constant 0 : index
    %c0_24 = arith.constant 0 : index
    %92 = vector.load %arg3[%c0_23, %c0_24] : memref<2x1024xf32, #tpu.memory_space<vmem>>, vector<2x1024xf32>
    tpu.vector_store %arg3[%c0_23, %c0_24], %91 {strides = array<i32>} : memref<2x1024xf32, #tpu.memory_space<vmem>>, vector<2x1024xf32>,
    return
  }
  func.func @transform_0(%arg0: i32, %arg1: memref<1xi32, #tpu.memory_space<smem>>) -> (i32, i32) {
    %c0_i32 = arith.constant 0 : i32
    %c0_i32_0 = arith.constant 0 : i32
    return %arg0, %c0_i32 : i32, i32
  }
  func.func @transform_1(%arg0: i32, %arg1: memref<1xi32, #tpu.memory_space<smem>>) -> (i32, i32) {
    %c0_i32 = arith.constant 0 : i32
    %c0_i32_0 = arith.constant 0 : i32
    return %arg0, %c0_i32 : i32, i32
  }
}

</mosaic_0001>

<bundles_post_ra>
// kernel: tpu_custom_call.1
= control target key start
LH: loop header
LB: loop body
LE: loop exit
PB: predicated region body
PF: predicated region fallthrough
CT: control target
= control target key end

     0   :  { %8 = vsyncpa [#allocation5], 0  ;;  %s734_s0 = inlined_call_operand.<no memory space> [shape: s32[1], index: 0, kind: input, shape index: {}]   ;;  %s735_s1 = inlined_call_operand.hbm [shape: f32[2,1024], index: 1, kind: input, shape index: {}]   ;;  %s736_s2 = inlined_call_operand.hbm [shape: f32[2,1024], index: 2, kind: output, shape index: {}]  }
   0x1   :  { %9 = vsyncpa [#allocation6], 0  ;;  %s536_s9 = smov [#allocation4]  }
   0x2   :  { %s16_s10 = sshll.u32 %s536_s9, 4  ;;  %s17_s10 = int_to_ptr.vmem [resolvable:$true] %s16_s10 }
   0x3   :  { %s500_s11 = scalar_lea.vmem %s17_s10, 256  ;;  %p505_p1 = scmp.lt.s32.totalorder %s17_s10, %s17_s10 }
   0x4   :  { %p501_p0 = scmp.ne.s32.totalorder %s17_s10, %s500_s11  ;;  %p506_p2 = scmp.lt.s32.totalorder %s500_s11, %s500_s11 }
   0x6   :  { %p507_p3 = por %p506_p2, %p505_p1 }
   0x8   :  { %p508_p4 = pnand %p507_p3, %p501_p0 }
   0xa   :  { %511 = shalt.err (!%p508_p4)
}
   0xb   :  { %19 = dma.hbm_to_vmem [thread:$0]  %s735_s1, 256, %s17_s10, [#allocation5]  }
   0xc   :  { %532 = dma.done.wait [#allocation5], 256  }
   0xd   :  { %533 = vsyncadd [#allocation5], 4294967040  ;;  %v24_v0 = vlaneseq  ;;  %s560_s16 = smul.u32 2654435769, %s734_s0  ;;  %v537_v12 = vmov 1983009808  }
   0xe   :  { %v566_v13 = vunpack.c.l.s4 %v537_v12  ;;  %s538_s19 = smov [#allocation7]  }
   0xf   :  { %v562_v1 = vshrl.u32 %v24_v0, 7  ;;  %v27_v2 = vand.u32 127, %v24_v0  ;;  %s48_s17 = sadd.s32 2654435769, %s560_s16  ;;  %s130_s0 = sadd.s32 1013904242, %s560_s16 }
  0x10   :  { %v49_v11 = vstv %s48_s17  ;;  %s220_s1 = sadd.s32 3668340011, %s560_s16  ;;  %s310_s18 = sadd.s32 2027808484, %s560_s16  ;;  %v131_v48 = vstv %s130_s0  ;;  %v438_v49 = vunpack.c.0.s8 %v566_v13 }
  0x11   :  { %v28_v3 = vadd.s32 128, %v27_v2  ;;  %v29_v4 = vadd.s32 256, %v27_v2  ;;  %v30_v5 = vadd.s32 384, %v27_v2  ;;  %v31_v6 = vadd.s32 512, %v27_v2  ;;  %s480_s20 = sshll.u32 %s538_s19, 4  ;;  %s481_s20 = int_to_ptr.vmem [resolvable:$true] %s480_s20 }
  0x12   :  { %v32_v7 = vadd.s32 640, %v27_v2  ;;  %v33_v8 = vadd.s32 768, %v27_v2  ;;  %v34_v9 = vadd.s32 896, %v27_v2  ;;  %v37_v10 = vmul.u32 1024, %v562_v1  ;;  %s512_s21 = scalar_lea.vmem %s481_s20, 256  ;;  %p517_p6 = scmp.lt.s32.totalorder %s481_s20, %s481_s20 }
  0x13   :  { %v596_v52 = vstv %s220_s1  ;;  %v598_v53 = vstv %s310_s18  ;;  %p513_p5 = scmp.ne.s32.totalorder %s481_s20, %s512_s21  ;;  %p518_p7 = scmp.lt.s32.totalorder %s512_s21, %s512_s21 }
  0x14   :  { %v568_v14 = vadd.s32 %v37_v10, %v27_v2  ;;  %v570_v15 = vadd.s32 %v37_v10, %v28_v3  ;;  %v572_v16 = vadd.s32 %v37_v10, %v29_v4  ;;  %v574_v17 = vadd.s32 %v37_v10, %v30_v5 }
  0x15   :  { %v576_v18 = vadd.s32 %v37_v10, %v31_v6  ;;  %v578_v19 = vadd.s32 %v37_v10, %v32_v7  ;;  %v580_v20 = vadd.s32 %v37_v10, %v33_v8  ;;  %v582_v21 = vadd.s32 %v37_v10, %v34_v9  ;;  %p519_p8 = por %p518_p7, %p517_p6 }
  0x16   :  { %v50_v22 = vxor.u32 %v49_v11, %v568_v14  ;;  %v51_v23 = vxor.u32 %v49_v11, %v570_v15  ;;  %v52_v24 = vxor.u32 %v49_v11, %v572_v16  ;;  %v53_v25 = vxor.u32 %v49_v11, %v574_v17 }
  0x17   :  { %v54_v26 = vxor.u32 %v49_v11, %v576_v18  ;;  %v55_v27 = vxor.u32 %v49_v11, %v578_v19  ;;  %v56_v28 = vxor.u32 %v49_v11, %v580_v20  ;;  %v57_v29 = vxor.u32 %v49_v11, %v582_v21  ;;  %p520_p9 = pnand %p519_p8, %p513_p5 }
  0x18   :  { %v58_v30 = vshrl.u32 %v50_v22, 16  ;;  %v59_v31 = vshrl.u32 %v51_v23, 16  ;;  %v60_v32 = vshrl.u32 %v52_v24, 16  ;;  %v61_v33 = vshrl.u32 %v53_v25, 16 }
  0x19   :  { %v62_v34 = vshrl.u32 %v54_v26, 16  ;;  %v63_v35 = vshrl.u32 %v55_v27, 16  ;;  %v64_v36 = vshrl.u32 %v56_v28, 16  ;;  %v65_v37 = vshrl.u32 %v57_v29, 16 }
  0x1a   :  { %v66_v38 = vxor.u32 %v58_v30, %v50_v22  ;;  %v67_v39 = vxor.u32 %v59_v31, %v51_v23  ;;  %v68_v40 = vxor.u32 %v60_v32, %v52_v24  ;;  %v69_v41 = vxor.u32 %v61_v33, %v53_v25 }
  0x1b   :  { %v70_v42 = vxor.u32 %v62_v34, %v54_v26  ;;  %v71_v43 = vxor.u32 %v63_v35, %v55_v27  ;;  %v72_v44 = vxor.u32 %v64_v36, %v56_v28  ;;  %v73_v45 = vxor.u32 %v65_v37, %v57_v29 }
  0x1c   :  { %v74_v46 = vmul.u32 2146121005, %v66_v38  ;;  %v75_v47 = vmul.u32 2146121005, %v67_v39 }
  0x1d   :  { %v76_v50 = vmul.u32 2146121005, %v68_v40  ;;  %v77_v51 = vmul.u32 2146121005, %v69_v41  ;;  %v132_v40 = vxor.u32 %v131_v48, %v568_v14  ;;  %v133_v41 = vxor.u32 %v131_v48, %v570_v15 }
  0x1e   :  { %v78_v54 = vmul.u32 2146121005, %v70_v42  ;;  %v79_v55 = vmul.u32 2146121005, %v71_v43  ;;  %v82_v56 = vshrl.u32 %v74_v46, 15  ;;  %v83_v57 = vshrl.u32 %v75_v47, 15 }
  0x1f   :  { %v80_v58 = vmul.u32 2146121005, %v72_v44  ;;  %v81_v59 = vmul.u32 2146121005, %v73_v45  ;;  %v84_v60 = vshrl.u32 %v76_v50, 15  ;;  %v85_v61 = vshrl.u32 %v77_v51, 15 }
  0x20   :  { %v86_v62 = vshrl.u32 %v78_v54, 15  ;;  %v87_v63 = vshrl.u32 %v79_v55, 15  ;;  %v90_v0 = vxor.u32 %v82_v56, %v74_v46  ;;  %v91_v2 = vxor.u32 %v83_v57, %v75_v47 }
  0x21   :  { %v88_v3 = vshrl.u32 %v80_v58, 15  ;;  %v89_v4 = vshrl.u32 %v81_v59, 15  ;;  %v92_v5 = vxor.u32 %v84_v60, %v76_v50  ;;  %v93_v6 = vxor.u32 %v85_v61, %v77_v51 }
  0x22   :  { %v94_v7 = vxor.u32 %v86_v62, %v78_v54  ;;  %v95_v8 = vxor.u32 %v87_v63, %v79_v55  ;;  %v98_v9 = vmul.u32 2221713035, %v90_v0  ;;  %v99_v10 = vmul.u32 2221713035, %v91_v2 }
  0x23   :  { %v96_v11 = vxor.u32 %v88_v3, %v80_v58  ;;  %v97_v12 = vxor.u32 %v89_v4, %v81_v59  ;;  %v100_v22 = vmul.u32 2221713035, %v92_v5  ;;  %v101_v23 = vmul.u32 2221713035, %v93_v6 }
  0x24   :  { %v102_v24 = vmul.u32 2221713035, %v94_v7  ;;  %v103_v25 = vmul.u32 2221713035, %v95_v8  ;;  %v106_v26 = vshrl.u32 %v98_v9, 16  ;;  %v107_v27 = vshrl.u32 %v99_v10, 16 }
  0x25   :  { %v104_v28 = vmul.u32 2221713035, %v96_v11  ;;  %v105_v29 = vmul.u32 2221713035, %v97_v12  ;;  %v108_v30 = vshrl.u32 %v100_v22, 16  ;;  %v109_v31 = vshrl.u32 %v101_v23, 16 }
  0x26   :  { %v110_v32 = vshrl.u32 %v102_v24, 16  ;;  %v111_v33 = vshrl.u32 %v103_v25, 16  ;;  %v600_v34 = vxor.u32 %v106_v26, %v98_v9  ;;  %v602_v35 = vxor.u32 %v107_v27, %v99_v10 }
  0x27   :  { %v112_v36 = vshrl.u32 %v104_v28, 16  ;;  %v113_v37 = vshrl.u32 %v105_v29, 16  ;;  %v604_v38 = vxor.u32 %v108_v30, %v100_v22  ;;  %v606_v39 = vxor.u32 %v109_v31, %v101_v23 }
  0x28   :  { %v134_v42 = vxor.u32 %v131_v48, %v572_v16  ;;  %v135_v43 = vxor.u32 %v131_v48, %v574_v17  ;;  %v612_v44 = vxor.u32 %v110_v32, %v102_v24  ;;  %v614_v45 = vxor.u32 %v111_v33, %v103_v25 }
  0x29   :  { %v122_v46 = vshrl.u32 %v600_v34, 9  ;;  %v123_v47 = vshrl.u32 %v602_v35, 9  ;;  %v618_v50 = vxor.u32 %v112_v36, %v104_v28  ;;  %v620_v51 = vxor.u32 %v113_v37, %v105_v29 }
  0x2a   :  { %v136_v54 = vxor.u32 %v131_v48, %v576_v18  ;;  %v137_v55 = vxor.u32 %v131_v48, %v578_v19  ;;  %v124_v56 = vshrl.u32 %v604_v38, 9  ;;  %v125_v57 = vshrl.u32 %v606_v39, 9 }
  0x2b   :  { %v138_v58 = vxor.u32 %v131_v48, %v580_v20  ;;  %v139_v59 = vxor.u32 %v131_v48, %v582_v21  ;;  %v140_v60 = vshrl.u32 %v132_v40, 16  ;;  %v141_v61 = vshrl.u32 %v133_v41, 16 }
  0x2c   :  { %v142_v62 = vshrl.u32 %v134_v42, 16  ;;  %v143_v63 = vshrl.u32 %v135_v43, 16  ;;  %v144_v0 = vshrl.u32 %v136_v54, 16  ;;  %v145_v2 = vshrl.u32 %v137_v55, 16 }
  0x2d   :  { %v146_v3 = vshrl.u32 %v138_v58, 16  ;;  %v147_v4 = vshrl.u32 %v139_v59, 16  ;;  %v148_v5 = vxor.u32 %v140_v60, %v132_v40  ;;  %v149_v6 = vxor.u32 %v141_v61, %v133_v41 }
  0x2e   :  { %v150_v7 = vxor.u32 %v142_v62, %v134_v42  ;;  %v151_v8 = vxor.u32 %v143_v63, %v135_v43  ;;  %v152_v9 = vxor.u32 %v144_v0, %v136_v54  ;;  %v153_v10 = vxor.u32 %v145_v2, %v137_v55 }
  0x2f   :  { %v154_v11 = vxor.u32 %v146_v3, %v138_v58  ;;  %v155_v12 = vxor.u32 %v147_v4, %v139_v59  ;;  %v126_v22 = vshrl.u32 %v612_v44, 9  ;;  %v127_v48 = vshrl.u32 %v614_v45, 9 }
  0x30   :  { %v156_v23 = vmul.u32 2146121005, %v148_v5  ;;  %v157_v24 = vmul.u32 2146121005, %v149_v6  ;;  %v128_v25 = vshrl.u32 %v618_v50, 9  ;;  %v129_v26 = vshrl.u32 %v620_v51, 9 }
  0x31   :  { %v158_v27 = vmul.u32 2146121005, %v150_v7  ;;  %v159_v28 = vmul.u32 2146121005, %v151_v8  ;;  %v228_v35 = vxor.u32 %v596_v52, %v580_v20 }
  0x32   :  { %v160_v29 = vmul.u32 2146121005, %v152_v9  ;;  %v161_v30 = vmul.u32 2146121005, %v153_v10  ;;  %v164_v31 = vshrl.u32 %v156_v23, 15  ;;  %v165_v32 = vshrl.u32 %v157_v24, 15 }
  0x33   :  { %v162_v33 = vmul.u32 2146121005, %v154_v11  ;;  %v163_v36 = vmul.u32 2146121005, %v155_v12  ;;  %v166_v37 = vshrl.u32 %v158_v27, 15  ;;  %v167_v40 = vshrl.u32 %v159_v28, 15 }
  0x34   :  { %v168_v41 = vshrl.u32 %v160_v29, 15  ;;  %v169_v42 = vshrl.u32 %v161_v30, 15  ;;  %v172_v43 = vxor.u32 %v164_v31, %v156_v23  ;;  %v173_v54 = vxor.u32 %v165_v32, %v157_v24 }
  0x35   :  { %v170_v55 = vshrl.u32 %v162_v33, 15  ;;  %v171_v58 = vshrl.u32 %v163_v36, 15  ;;  %v174_v59 = vxor.u32 %v166_v37, %v158_v27  ;;  %v175_v60 = vxor.u32 %v167_v40, %v159_v28 }
  0x36   :  { %v176_v61 = vxor.u32 %v168_v41, %v160_v29  ;;  %v177_v62 = vxor.u32 %v169_v42, %v161_v30  ;;  %v180_v63 = vmul.u32 2221713035, %v172_v43  ;;  %v181_v0 = vmul.u32 2221713035, %v173_v54 }
  0x37   :  { %v178_v2 = vxor.u32 %v170_v55, %v162_v33  ;;  %v179_v3 = vxor.u32 %v171_v58, %v163_v36  ;;  %v182_v4 = vmul.u32 2221713035, %v174_v59  ;;  %v183_v5 = vmul.u32 2221713035, %v175_v60 }
  0x38   :  { %v184_v6 = vmul.u32 2221713035, %v176_v61  ;;  %v185_v7 = vmul.u32 2221713035, %v177_v62  ;;  %v188_v8 = vshrl.u32 %v180_v63, 16  ;;  %v189_v9 = vshrl.u32 %v181_v0, 16 }
  0x39   :  { %v186_v10 = vmul.u32 2221713035, %v178_v2  ;;  %v187_v11 = vmul.u32 2221713035, %v179_v3  ;;  %v190_v12 = vshrl.u32 %v182_v4, 16  ;;  %v191_v23 = vshrl.u32 %v183_v5, 16 }
  0x3a   :  { %v192_v24 = vshrl.u32 %v184_v6, 16  ;;  %v193_v31 = vshrl.u32 %v185_v7, 16  ;;  %v196_v27 = vxor.u32 %v188_v8, %v180_v63  ;;  %v197_v28 = vxor.u32 %v189_v9, %v181_v0 }
  0x3b   :  { %v194_v29 = vshrl.u32 %v186_v10, 16  ;;  %v195_v30 = vshrl.u32 %v187_v11, 16  ;;  %v198_v32 = vxor.u32 %v190_v12, %v182_v4  ;;  %v199_v37 = vxor.u32 %v191_v23, %v183_v5 }
  0x3c   :  { %v200_v33 = vxor.u32 %v192_v24, %v184_v6  ;;  %v201_v36 = vxor.u32 %v193_v31, %v185_v7  ;;  %v204_v40 = vshrl.u32 %v196_v27, 9  ;;  %v205_v41 = vshrl.u32 %v197_v28, 9 }
  0x3d   :  { %v202_v42 = vxor.u32 %v194_v29, %v186_v10  ;;  %v203_v43 = vxor.u32 %v195_v30, %v187_v11  ;;  %v206_v54 = vshrl.u32 %v198_v32, 9  ;;  %v207_v55 = vshrl.u32 %v199_v37, 9 }
  0x3e   :  { %v222_v58 = vxor.u32 %v596_v52, %v568_v14  ;;  %v223_v59 = vxor.u32 %v596_v52, %v570_v15  ;;  %v224_v60 = vxor.u32 %v596_v52, %v572_v16  ;;  %v225_v61 = vxor.u32 %v596_v52, %v574_v17 }
  0x3f   :  { %v208_v62 = vshrl.u32 %v200_v33, 9  ;;  %v209_v63 = vshrl.u32 %v201_v36, 9  ;;  %v642_v0 = vadd.s32 %v204_v40, %v122_v46  ;;  %v646_v2 = vadd.s32 %v205_v41, %v123_v47 }
  0x40   :  { %v210_v3 = vshrl.u32 %v202_v42, 9  ;;  %v211_v4 = vshrl.u32 %v203_v43, 9  ;;  %v226_v5 = vxor.u32 %v596_v52, %v576_v18  ;;  %v227_v6 = vxor.u32 %v596_v52, %v578_v19 }
  0x41   :  { %v654_v7 = vadd.s32 %v206_v54, %v124_v56  ;;  %v658_v34 = vadd.s32 %v207_v55, %v125_v57  ;;  %v229_v46 = vxor.u32 %v596_v52, %v582_v21  ;;  %v230_v47 = vshrl.u32 %v222_v58, 16 }
  0x42   :  { %v231_v8 = vshrl.u32 %v223_v59, 16  ;;  %v232_v9 = vshrl.u32 %v224_v60, 16  ;;  %v233_v10 = vshrl.u32 %v225_v61, 16  ;;  %v234_v11 = vshrl.u32 %v226_v5, 16 }
  0x43   :  { %v235_v12 = vshrl.u32 %v227_v6, 16  ;;  %v236_v23 = vshrl.u32 %v228_v35, 16  ;;  %v237_v38 = vshrl.u32 %v229_v46, 16  ;;  %v238_v56 = vxor.u32 %v230_v47, %v222_v58 }
  0x44   :  { %v239_v24 = vxor.u32 %v231_v8, %v223_v59  ;;  %v240_v31 = vxor.u32 %v232_v9, %v224_v60  ;;  %v241_v39 = vxor.u32 %v233_v10, %v225_v61  ;;  %v242_v57 = vxor.u32 %v234_v11, %v226_v5 }
  0x45   :  { %v243_v27 = vxor.u32 %v235_v12, %v227_v6  ;;  %v244_v28 = vxor.u32 %v236_v23, %v228_v35  ;;  %v245_v29 = vxor.u32 %v237_v38, %v229_v46  ;;  %v666_v30 = vadd.s32 %v208_v62, %v126_v22 }
  0x46   :  { %v670_v52 = vadd.s32 %v209_v63, %v127_v48  ;;  %v246_v32 = vmul.u32 2146121005, %v238_v56  ;;  %v247_v37 = vmul.u32 2146121005, %v239_v24  ;;  %v674_v33 = vadd.s32 %v210_v3, %v128_v25 }
  0x47   :  { %v678_v36 = vadd.s32 %v211_v4, %v129_v26  ;;  %v248_v40 = vmul.u32 2146121005, %v240_v31  ;;  %v249_v41 = vmul.u32 2146121005, %v241_v39 }
  0x48   :  { %v250_v42 = vmul.u32 2146121005, %v242_v57  ;;  %v251_v44 = vmul.u32 2146121005, %v243_v27  ;;  %v254_v22 = vshrl.u32 %v246_v32, 15  ;;  %v255_v43 = vshrl.u32 %v247_v37, 15 }
  0x49   :  { %v252_v54 = vmul.u32 2146121005, %v244_v28  ;;  %v253_v45 = vmul.u32 2146121005, %v245_v29  ;;  %v256_v48 = vshrl.u32 %v248_v40, 15  ;;  %v257_v55 = vshrl.u32 %v249_v41, 15 }
  0x4a   :  { %v258_v58 = vshrl.u32 %v250_v42, 15  ;;  %v259_v59 = vshrl.u32 %v251_v44, 15  ;;  %v262_v60 = vxor.u32 %v254_v22, %v246_v32  ;;  %v263_v50 = vxor.u32 %v255_v43, %v247_v37 }
  0x4b   :  { %v260_v25 = vshrl.u32 %v252_v54, 15  ;;  %v261_v61 = vshrl.u32 %v253_v45, 15  ;;  %v264_v62 = vxor.u32 %v256_v48, %v248_v40  ;;  %v265_v51 = vxor.u32 %v257_v55, %v249_v41 }
  0x4c   :  { %v266_v26 = vxor.u32 %v258_v58, %v250_v42  ;;  %v267_v63 = vxor.u32 %v259_v59, %v251_v44  ;;  %v270_v3 = vmul.u32 2221713035, %v262_v60  ;;  %v271_v4 = vmul.u32 2221713035, %v263_v50 }
  0x4d   :  { %v268_v5 = vxor.u32 %v260_v25, %v252_v54  ;;  %v269_v6 = vxor.u32 %v261_v61, %v253_v45  ;;  %v272_v35 = vmul.u32 2221713035, %v264_v62  ;;  %v273_v46 = vmul.u32 2221713035, %v265_v51 }
  0x4e   :  { %v274_v47 = vmul.u32 2221713035, %v266_v26  ;;  %v275_v8 = vmul.u32 2221713035, %v267_v63  ;;  %v278_v9 = vshrl.u32 %v270_v3, 16  ;;  %v279_v10 = vshrl.u32 %v271_v4, 16 }
  0x4f   :  { %v276_v11 = vmul.u32 2221713035, %v268_v5  ;;  %v277_v12 = vmul.u32 2221713035, %v269_v6  ;;  %v280_v23 = vshrl.u32 %v272_v35, 16  ;;  %v281_v38 = vshrl.u32 %v273_v46, 16 }
  0x50   :  { %v282_v56 = vshrl.u32 %v274_v47, 16  ;;  %v283_v24 = vshrl.u32 %v275_v8, 16  ;;  %v286_v31 = vxor.u32 %v278_v9, %v270_v3  ;;  %v287_v39 = vxor.u32 %v279_v10, %v271_v4 }
  0x51   :  { %v284_v57 = vshrl.u32 %v276_v11, 16  ;;  %v285_v27 = vshrl.u32 %v277_v12, 16  ;;  %v288_v28 = vxor.u32 %v280_v23, %v272_v35  ;;  %v289_v29 = vxor.u32 %v281_v38, %v273_v46 }
  0x52   :  { %v290_v32 = vxor.u32 %v282_v56, %v274_v47  ;;  %v291_v37 = vxor.u32 %v283_v24, %v275_v8  ;;  %v294_v40 = vshrl.u32 %v286_v31, 9  ;;  %v295_v41 = vshrl.u32 %v287_v39, 9 }
  0x53   :  { %v292_v42 = vxor.u32 %v284_v57, %v276_v11  ;;  %v293_v44 = vxor.u32 %v285_v27, %v277_v12  ;;  %v296_v22 = vshrl.u32 %v288_v28, 9  ;;  %v297_v43 = vshrl.u32 %v289_v29, 9 }
  0x54   :  { %v312_v54 = vxor.u32 %v598_v53, %v568_v14  ;;  %v313_v45 = vxor.u32 %v598_v53, %v570_v15  ;;  %v314_v48 = vxor.u32 %v598_v53, %v572_v16  ;;  %v315_v55 = vxor.u32 %v598_v53, %v574_v17 }
  0x55   :  { %v298_v58 = vshrl.u32 %v290_v32, 9  ;;  %v299_v59 = vshrl.u32 %v291_v37, 9  ;;  %v689_v60 = vadd.s32 %v294_v40, %v642_v0  ;;  %v692_v50 = vadd.s32 %v295_v41, %v646_v2 }
  0x56   :  { %v300_v25 = vshrl.u32 %v292_v42, 9  ;;  %v301_v61 = vshrl.u32 %v293_v44, 9  ;;  %v316_v14 = vxor.u32 %v598_v53, %v576_v18  ;;  %v317_v15 = vxor.u32 %v598_v53, %v578_v19 }
  0x57   :  { %v699_v16 = vadd.s32 %v296_v22, %v654_v7  ;;  %v702_v17 = vadd.s32 %v297_v43, %v658_v34  ;;  %v318_v0 = vxor.u32 %v598_v53, %v580_v20  ;;  %v319_v2 = vxor.u32 %v598_v53, %v582_v21 }
  0x58   :  { %v320_v62 = vshrl.u32 %v312_v54, 16  ;;  %v321_v51 = vshrl.u32 %v313_v45, 16  ;;  %v322_v26 = vshrl.u32 %v314_v48, 16  ;;  %v323_v63 = vshrl.u32 %v315_v55, 16 }
  0x59   :  { %v324_v18 = vshrl.u32 %v316_v14, 16  ;;  %v325_v3 = vshrl.u32 %v317_v15, 16  ;;  %v326_v4 = vshrl.u32 %v318_v0, 16  ;;  %v327_v19 = vshrl.u32 %v319_v2, 16 }
  0x5a   :  { %v328_v5 = vxor.u32 %v320_v62, %v312_v54  ;;  %v329_v7 = vxor.u32 %v321_v51, %v313_v45  ;;  %v330_v6 = vxor.u32 %v322_v26, %v314_v48  ;;  %v331_v35 = vxor.u32 %v323_v63, %v315_v55 }
  0x5b   :  { %v332_v34 = vxor.u32 %v324_v18, %v316_v14  ;;  %v333_v46 = vxor.u32 %v325_v3, %v317_v15  ;;  %v334_v47 = vxor.u32 %v326_v4, %v318_v0  ;;  %v335_v8 = vxor.u32 %v327_v19, %v319_v2 }
  0x5c   :  { %v709_v20 = vadd.s32 %v298_v58, %v666_v30  ;;  %v712_v21 = vadd.s32 %v299_v59, %v670_v52  ;;  %v336_v53 = vmul.u32 2146121005, %v328_v5  ;;  %v337_v9 = vmul.u32 2146121005, %v329_v7 }
  0x5d   :  { %v715_v10 = vadd.s32 %v300_v25, %v674_v33  ;;  %v718_v11 = vadd.s32 %v301_v61, %v678_v36  ;;  %v338_v12 = vmul.u32 2146121005, %v330_v6  ;;  %v339_v23 = vmul.u32 2146121005, %v331_v35 }
  0x5e   :  { %v340_v38 = vmul.u32 2146121005, %v332_v34  ;;  %v341_v56 = vmul.u32 2146121005, %v333_v46  ;;  %v344_v24 = vshrl.u32 %v336_v53, 15  ;;  %v345_v31 = vshrl.u32 %v337_v9, 15 }
  0x5f   :  { %v342_v39 = vmul.u32 2146121005, %v334_v47  ;;  %v343_v30 = vmul.u32 2146121005, %v335_v8  ;;  %v346_v57 = vshrl.u32 %v338_v12, 15  ;;  %v347_v27 = vshrl.u32 %v339_v23, 15 }
  0x60   :  { %v348_v52 = vshrl.u32 %v340_v38, 15  ;;  %v349_v28 = vshrl.u32 %v341_v56, 15  ;;  %v352_v29 = vxor.u32 %v344_v24, %v336_v53  ;;  %v353_v32 = vxor.u32 %v345_v31, %v337_v9 }
  0x61   :  { %v350_v37 = vshrl.u32 %v342_v39, 15  ;;  %v351_v33 = vshrl.u32 %v343_v30, 15  ;;  %v354_v40 = vxor.u32 %v346_v57, %v338_v12  ;;  %v355_v41 = vxor.u32 %v347_v27, %v339_v23 }
  0x62   :  { %v356_v36 = vxor.u32 %v348_v52, %v340_v38  ;;  %v357_v42 = vxor.u32 %v349_v28, %v341_v56  ;;  %v360_v44 = vmul.u32 2221713035, %v352_v29  ;;  %v361_v22 = vmul.u32 2221713035, %v353_v32 }
  0x63   :  { %v358_v43 = vxor.u32 %v350_v37, %v342_v39  ;;  %v359_v54 = vxor.u32 %v351_v33, %v343_v30  ;;  %v362_v45 = vmul.u32 2221713035, %v354_v40  ;;  %v363_v48 = vmul.u32 2221713035, %v355_v41 }
  0x64   :  { %v364_v55 = vmul.u32 2221713035, %v356_v36  ;;  %v365_v58 = vmul.u32 2221713035, %v357_v42  ;;  %v368_v59 = vshrl.u32 %v360_v44, 16  ;;  %v369_v25 = vshrl.u32 %v361_v22, 16 }
  0x65   :  { %v366_v61 = vmul.u32 2221713035, %v358_v43  ;;  %v367_v14 = vmul.u32 2221713035, %v359_v54  ;;  %v370_v15 = vshrl.u32 %v362_v45, 16  ;;  %v371_v0 = vshrl.u32 %v363_v48, 16 }
  0x66   :  { %v372_v2 = vshrl.u32 %v364_v55, 16  ;;  %v373_v62 = vshrl.u32 %v365_v58, 16  ;;  %v376_v51 = vxor.u32 %v368_v59, %v360_v44  ;;  %v377_v26 = vxor.u32 %v369_v25, %v361_v22 }
  0x67   :  { %v374_v63 = vshrl.u32 %v366_v61, 16  ;;  %v375_v18 = vshrl.u32 %v367_v14, 16  ;;  %v378_v3 = vxor.u32 %v370_v15, %v362_v45  ;;  %v379_v4 = vxor.u32 %v371_v0, %v363_v48  ;;  %v424_v15 = vld [vmem:[#allocation4] sm:$0xff] }
  0x68   :  { %v380_v19 = vxor.u32 %v372_v2, %v364_v55  ;;  %v381_v5 = vxor.u32 %v373_v62, %v365_v58  ;;  %v384_v7 = vshrl.u32 %v376_v51, 9  ;;  %v385_v6 = vshrl.u32 %v377_v26, 9  ;;  %v425_v62 = vld [vmem:[#allocation4 + $0x8] sm:$0xff] }
  0x69   :  { %v382_v35 = vxor.u32 %v374_v63, %v366_v61  ;;  %v383_v34 = vxor.u32 %v375_v18, %v367_v14  ;;  %v386_v46 = vshrl.u32 %v378_v3, 9  ;;  %v387_v47 = vshrl.u32 %v379_v4, 9 }
  0x6a   :  { %v388_v8 = vshrl.u32 %v380_v19, 9  ;;  %v389_v53 = vshrl.u32 %v381_v5, 9  ;;  %v392_v9 = vadd.s32 %v384_v7, %v689_v60  ;;  %v393_v12 = vadd.s32 %v385_v6, %v692_v50 }
  0x6b   :  { %v390_v23 = vshrl.u32 %v382_v35, 9  ;;  %v391_v38 = vshrl.u32 %v383_v34, 9  ;;  %v394_v56 = vadd.s32 %v386_v46, %v699_v16  ;;  %v395_v24 = vadd.s32 %v387_v47, %v702_v17 }
  0x6c   :  { %v396_v31 = vadd.s32 %v388_v8, %v709_v20  ;;  %v397_v39 = vadd.s32 %v389_v53, %v712_v21  ;;  %v400_v30 = vcvt.s32.f32 %v392_v9  ;;  %v401_v57 = vcvt.s32.f32 %v393_v12 }
  0x6d   :  { %v398_v27 = vadd.s32 %v390_v23, %v715_v10  ;;  %v399_v52 = vadd.s32 %v391_v38, %v718_v11  ;;  %v402_v28 = vcvt.s32.f32 %v394_v56  ;;  %v403_v60 = vcvt.s32.f32 %v395_v24 }
  0x6e   :  { %v404_v29 = vcvt.s32.f32 %v396_v31  ;;  %v405_v50 = vcvt.s32.f32 %v397_v39  ;;  %v408_v32 = vmul.f32 2.0647654e-08, %v400_v30  ;;  %v409_v37 = vmul.f32 2.0647654e-08, %v401_v57 }
  0x6f   :  { %v406_v33 = vcvt.s32.f32 %v398_v27  ;;  %v407_v16 = vcvt.s32.f32 %v399_v52  ;;  %v410_v40 = vmul.f32 2.0647654e-08, %v402_v28  ;;  %v411_v17 = vmul.f32 2.0647654e-08, %v403_v60 }
  0x70   :  { %v412_v41 = vmul.f32 2.0647654e-08, %v404_v29  ;;  %v413_v20 = vmul.f32 2.0647654e-08, %v405_v50  ;;  %v416_v36 = vadd.f32 -0.34641016, %v408_v32  ;;  %v441_v10 = vsub.s32 %v438_v49, %v562_v1 }
  0x71   :  { %v414_v21 = vmul.f32 2.0647654e-08, %v406_v33  ;;  %v415_v42 = vmul.f32 2.0647654e-08, %v407_v16  ;;  %v417_v44 = vadd.f32 -0.34641016, %v409_v37 }
  0x72   :  { %v418_v11 = vadd.f32 -0.34641016, %v410_v40  ;;  %v419_v22 = vadd.f32 -0.34641016, %v411_v17  ;;  %v420_v43 = vadd.f32 -0.34641016, %v412_v41 }
  0x73   :  { %v421_v54 = vadd.f32 -0.34641016, %v413_v20  ;;  %v422_v45 = vadd.f32 -0.34641016, %v414_v21  ;;  %v423_v48 = vadd.f32 -0.34641016, %v415_v42  ;;  %v434_v55 = vcombine.low %v416_v36, %v417_v44 }
  0x74   :  { %v435_v58 = vcombine.low %v418_v11, %v419_v22 }
  0x75   :  { %v442_v59 = vrot.slane %v434_v55, %v441_v10  ;;  %v451_v25 = vcombine.low %v420_v43, %v421_v54  ;;  %v452_v61 = vcombine.low %v422_v45, %v423_v48 }
  0x76   :  { %v449_v14 = vrot.slane %v435_v58, %v441_v10 }
  0x77   :  { %v459_v0 = vrot.slane %v451_v25, %v441_v10  ;;  %v466_v2 = vrot.slane %v452_v61, %v441_v10 }
  0x78   :  { %v450_v51 = vcombine.low %v442_v59, %v449_v14 }
  0x79   :  { %v467_v1 = vcombine.low %v459_v0, %v466_v2 }
  0x7a   :  { %v470_v13 = vadd.f32 %v450_v51, %v424_v15 }
  0x7b   :  { %v471_v49 = vadd.f32 %v467_v1, %v425_v62 }
  0x7c   :  { %472 = vst [vmem:[#allocation7] sm:$0xff] %v470_v13 }
  0x7d   :  { %473 = vst [vmem:[#allocation7 + $0x8] sm:$0xff] %v471_v49 }
  0x7e   :  { %523 = shalt.err (!%p520_p9)
}
  0x7f   :  { %483 = dma.vmem_to_hbm [thread:$0]  %s481_s20, 256, %s736_s2, [#allocation6]  }
  0x80   :  { %534 = dma.done.wait [#allocation6], 256  }
  0x81   :  { %535 = vsyncadd [#allocation6], 4294967040 }
  0x82   :  { %487 = vsyncpa [#allocation5], 1 }
  0x83   :  { %488 = vsyncpa [#allocation6], 1 }

</bundles_post_ra>
